<compile_context>
chip_gen: v7x
topology: tpu7x:2x2x1
jax: 0.10.0
libtpu: 0.0.40
codegen_flags: <defaults>
</compile_context>

<pallas_src>
import functools

import jax
import jax.numpy as jnp
from jax import lax
from jax.experimental import pallas as pl
from jax.experimental.pallas import tpu as pltpu


def dyrelu_coef_kernel(x_ref, w1_ref, b1_ref, w2_ref, b2_ref, out_ref, acc_ref,
                       *, inv_hw, hw, thw, n_chunks, use_chunks, needs_mask,
                       unroll):
    """grid = (batch_blocks, spatial_steps); spatial (reduction) axis last."""

    def fc_head(theta):
        # theta: [nb, C] f32.  Tiny FCs on nb rows at once.
        h = jnp.dot(theta, w1_ref[...],
                    preferred_element_type=jnp.float32) + b1_ref[...]
        h = jnp.maximum(h, 0.0)                            # fc1 + ReLU
        t = jnp.dot(h, w2_ref[...],
                    preferred_element_type=jnp.float32) + b2_ref[...]
        out_ref[0] = 2.0 * jax.nn.sigmoid(t) - 1.0         # 2*sigmoid - 1

    if not use_chunks:
        # Single full-extent spatial block (hw not a multiple of 128 but the
        # whole row fits the VMEM budget).  Mosaic handles the ragged lane
        # reduce; exactly one grid step along the spatial axis.
        theta = jnp.sum(x_ref[...].astype(jnp.float32), axis=-1) * inv_hw
        fc_head(theta)
        return

    s = pl.program_id(1)
    last = pl.num_programs(1) - 1

    @pl.when(s == 0)
    def _zero_acc():
        acc_ref[...] = jnp.zeros_like(acc_ref)

    if needs_mask:
        # Hoisted out of the chunk loop (JAX does not CSE broadcast_in_dim).
        lane = lax.broadcasted_iota(jnp.int32, acc_ref.shape, 2)
        limit0 = hw - s * thw        # valid lanes remaining in this tile

    def chunk_body(j, carry):
        off = pl.multiple_of(j * 128, 128)
        chunk = x_ref[:, :, pl.ds(off, 128)].astype(jnp.float32)
        if needs_mask:
            chunk = jnp.where(lane < (limit0 - off), chunk, 0.0)
        acc_ref[...] += chunk        # lane-wide VPU adds, lane-dense store
        return carry

    lax.fori_loop(0, n_chunks, chunk_body, 0, unroll=unroll)

    @pl.when(s == last)
    def _finalize():
        # Single cross-lane reduction + tiny FCs, once per batch block.
        theta = jnp.sum(acc_ref[...], axis=-1) * inv_hw     # [nb, C]
        fc_head(theta)


def _per_gen_block_budget():
    """Per x-block byte budget (elements sized as f32 for safety).

    Double buffering means ~2x this lives in VMEM plus small weights/acc, so
    stay inside the scoped-VMEM defaults on every generation:
      v5e: 16 MiB scoped default          -> 4 MiB blocks
      v6e: 32 MiB scoped / 128 MiB phys   -> 8 MiB blocks
      v7x: 32 MiB scoped /  64 MiB phys   -> 8 MiB blocks (fast HBM, bigger steps)
    """
    try:
        kind = jax.devices()[0].device_kind.lower()
    except Exception:
        kind = ""
    if ("v6" in kind) or ("v7" in kind):
        return 8 << 20
    return 4 << 20


def dyrelu_get_relu_coefs(x_nchw, w1, b1, w2, b2, *, max_block_bytes=None):
    """x_nchw: [N, C, H, W] (f32 or bf16). Returns theta: [N, 2*k] float32."""
    N, C, H, W = x_nchw.shape
    hw = H * W
    hidden = w1.shape[1]
    out_dim = w2.shape[1]

    x3 = x_nchw.reshape(N, C, hw)            # keep HBM dtype (bf16 supported)

    if max_block_bytes is None:
        max_block_bytes = _per_gen_block_budget()
    # Size by f32 element count so the in-kernel f32 upcast never blows VMEM.
    elem_budget = max(128 * 8, max_block_bytes // 4)

    # --- spatial tile (thw): multiple of 128 lanes, or the full extent -------
    if C * hw <= elem_budget or hw <= 128:
        thw = hw                              # whole spatial extent per step
    else:
        thw = max(128, (elem_budget // C) // 128 * 128)
        thw = min(thw, hw)
    s_steps = pl.cdiv(hw, thw)
    use_chunks = (thw % 128 == 0)             # else: single full-extent block
    needs_mask = use_chunks and (hw % thw != 0)
    n_chunks = (thw // 128) if use_chunks else 0

    # --- adaptive batch grouping (nb divides N, block stays under budget) ----
    nb_cap = max(1, elem_budget // max(1, C * thw))
    nb = 1
    for d in range(min(N, nb_cap), 0, -1):
        if N % d == 0:
            nb = d
            break

    grid = (N // nb, s_steps)

    kernel = functools.partial(
        dyrelu_coef_kernel,
        inv_hw=1.0 / float(hw), hw=hw, thw=thw, n_chunks=n_chunks,
        use_chunks=use_chunks, needs_mask=needs_mask,
        unroll=(n_chunks <= 8))

    flops = (N * C * hw                       # spatial-sum adds
             + 2 * N * C * hidden + 2 * N * hidden * out_dim
             + 4 * N * out_dim)
    bytes_accessed = (N * C * hw * x3.dtype.itemsize
                      + 4 * (C * hidden + hidden + hidden * out_dim + out_dim)
                      + 4 * N * out_dim)

    out = pl.pallas_call(
        kernel,
        out_shape=jax.ShapeDtypeStruct((N // nb, nb, out_dim), jnp.float32),
        grid_spec=pltpu.PrefetchScalarGridSpec(
            num_scalar_prefetch=0,
            grid=grid,
            in_specs=[
                # x: stream (nb, C, thw) spatial tiles; full-extent C keeps the
                # (8,128) sublane rule satisfied for any dtype; ragged tail is
                # masked inside the kernel (no host-side pad / extra HBM pass).
                pl.BlockSpec((nb, C, thw), lambda i, s: (i, 0, s)),
                # weights / biases: full blocks, constant index maps -> DMA'd
                # once, VMEM-resident across all grid steps.
                pl.BlockSpec((C, hidden), lambda i, s: (0, 0)),
                pl.BlockSpec((1, hidden), lambda i, s: (0, 0)),
                pl.BlockSpec((hidden, out_dim), lambda i, s: (0, 0)),
                pl.BlockSpec((1, out_dim), lambda i, s: (0, 0)),
            ],
            out_specs=pl.BlockSpec((1, nb, out_dim), lambda i, s: (i, 0, 0)),
            # lane-wide accumulator: per-step VPU adds, one XLU reduce at end.
            scratch_shapes=[pltpu.VMEM((nb, C, 128), jnp.float32)],
        ),
        compiler_params=pltpu.CompilerParams(
            dimension_semantics=("parallel", "arbitrary")),
        cost_estimate=pl.CostEstimate(
            flops=flops,
            transcendentals=N * out_dim,
            bytes_accessed=bytes_accessed),
    )(x3,
      w1.astype(jnp.float32),
      b1.reshape(1, hidden).astype(jnp.float32),
      w2.astype(jnp.float32),
      b2.reshape(1, out_dim).astype(jnp.float32))
    return out.reshape(N, out_dim)


def reference_get_relu_coefs(x_nchw, w1, b1, w2, b2):
    theta = jnp.mean(x_nchw.astype(jnp.float32), axis=-1)
    theta = jnp.mean(theta, axis=-1)
    theta = theta @ w1 + b1
    theta = jnp.maximum(theta, 0.0)
    theta = theta @ w2 + b2
    return 2.0 * jax.nn.sigmoid(theta) - 1.0


if __name__ == "__main__":
    # DyReLU(in_channel=8, reduction=4, k=2, conv_type='2d')
    in_channel, reduction, k = 8, 4, 2
    hidden = in_channel // reduction          # 2
    out_dim = 2 * k                           # 4
    N, H, W = 2, 16, 16

    key = jax.random.PRNGKey(0)
    kx, k1, k2, k3, k4 = jax.random.split(key, 5)

    x = jax.random.normal(kx, (N, in_channel, H, W), dtype=jnp.float32)

    # Deterministic PyTorch-Linear-style init: U(-1/sqrt(fan_in), 1/sqrt(fan_in)).
    # Weights stored as [in, out] (transpose of torch's [out, in]) -> x @ W.
    lim1 = 1.0 / jnp.sqrt(in_channel)
    w1 = jax.random.uniform(k1, (in_channel, hidden), jnp.float32, -lim1, lim1)
    b1 = jax.random.uniform(k2, (hidden,), jnp.float32, -lim1, lim1)
    lim2 = 1.0 / jnp.sqrt(hidden)
    w2 = jax.random.uniform(k3, (hidden, out_dim), jnp.float32, -lim2, lim2)
    b2 = jax.random.uniform(k4, (out_dim,), jnp.float32, -lim2, lim2)

    # Registered buffers of the module (unused by get_relu_coefs / base forward).
    lambdas = jnp.array([1.0] * k + [0.5] * k, dtype=jnp.float32)
    init_v = jnp.array([1.0] + [0.0] * (2 * k - 1), dtype=jnp.float32)

    # f32 activation path (hw = 256: single-step, chunked, nb = 2).
    theta = jax.block_until_ready(dyrelu_get_relu_coefs(x, w1, b1, w2, b2))
    ref = reference_get_relu_coefs(x, w1, b1, w2, b2)
    assert theta.shape == (N, out_dim)
    assert jnp.allclose(theta, ref, atol=1e-5, rtol=1e-5), (theta, ref)

    # bf16 streaming path: x stays bf16 in HBM, upcast inside the kernel.
    x_bf16 = x.astype(jnp.bfloat16)
    theta_bf16 = jax.block_until_ready(
        dyrelu_get_relu_coefs(x_bf16, w1, b1, w2, b2))
    ref_bf16 = reference_get_relu_coefs(x_bf16, w1, b1, w2, b2)
    assert jnp.allclose(theta_bf16, ref_bf16, atol=3e-2, rtol=3e-2), (
        theta_bf16, ref_bf16)

    # hw = 196 (not a multiple of 128): single full-extent block, no pad.
    x_ragged = jax.random.normal(k1, (N, in_channel, 14, 14), jnp.float32)
    t_ragged = jax.block_until_ready(
        dyrelu_get_relu_coefs(x_ragged, w1, b1, w2, b2))
    r_ragged = reference_get_relu_coefs(x_ragged, w1, b1, w2, b2)
    assert jnp.allclose(t_ragged, r_ragged, atol=1e-5, rtol=1e-5), (
        t_ragged, r_ragged)

    # Forced tiny block budget: exercises the multi-step streaming path with an
    # in-kernel-masked ragged tail (hw = 900, thw = 512, 2 spatial steps).
    x_stream = jax.random.normal(k2, (N, in_channel, 30, 30), jnp.float32)
    t_stream = jax.block_until_ready(
        dyrelu_get_relu_coefs(x_stream, w1, b1, w2, b2,
                              max_block_bytes=16 * 1024))
    r_stream = reference_get_relu_coefs(x_stream, w1, b1, w2, b2)
    assert jnp.allclose(t_stream, r_stream, atol=1e-5, rtol=1e-5), (
        t_stream, r_stream)

    print("KERNEL_OK")
</pallas_src>

<mosaic_0001>
module attributes {stable_mosaic.version = 11 : i64} {
  func.func @dyrelu_coef_kernel(%arg0: i32, %arg1: i32, %arg2: memref<2x8x256xf32, #tpu.memory_space<vmem>>, %arg3: memref<8x2xf32, #tpu.memory_space<vmem>>, %arg4: memref<1x2xf32, #tpu.memory_space<vmem>>, %arg5: memref<2x4xf32, #tpu.memory_space<vmem>>, %arg6: memref<1x4xf32, #tpu.memory_space<vmem>>, %arg7: memref<1x2x4xf32, #tpu.memory_space<vmem>>, %arg8: memref<2x8x128xf32, #tpu.memory_space<vmem>>) attributes {dimension_semantics = [#tpu.dimension_semantics<parallel>, #tpu.dimension_semantics<arbitrary>], iteration_bounds = array<i64: 1, 1>, scalar_prefetch = 0 : i64, scratch_operands = 1 : i64, tpu.core_type = #tpu.core_type<tc>, window_params = [{transform_indices = @transform_0, window_bounds = array<i64: 2, 8, 256>}, {pipeline_mode = #tpu.pipeline_mode<synchronous>, transform_indices = @transform_1, window_bounds = array<i64: 8, 2>}, {pipeline_mode = #tpu.pipeline_mode<synchronous>, transform_indices = @transform_2, window_bounds = array<i64: 1, 2>}, {pipeline_mode = #tpu.pipeline_mode<synchronous>, transform_indices = @transform_3, window_bounds = array<i64: 2, 4>}, {pipeline_mode = #tpu.pipeline_mode<synchronous>, transform_indices = @transform_4, window_bounds = array<i64: 1, 4>}, {transform_indices = @transform_5, window_bounds = array<i64: 1, 2, 4>}]} {
    %c0_i32 = arith.constant 0 : i32
    %0 = arith.cmpi eq, %arg1, %c0_i32 : i32
    %1 = arith.extui %0 : i1 to i32
    %c0_i32_0 = arith.constant 0 : i32
    %2 = arith.cmpi ne, %1, %c0_i32_0 : i32
    scf.if %2 {
      %cst = arith.constant 0.000000e+00 : f32
      %20 = vector.broadcast %cst : f32 to vector<2x8x128xf32>
      %c0_20 = arith.constant 0 : index
      %c0_21 = arith.constant 0 : index
      %c0_22 = arith.constant 0 : index
      %21 = vector.load %arg8[%c0_20, %c0_21, %c0_22] : memref<2x8x128xf32, #tpu.memory_space<vmem>>, vector<2x8x128xf32>
      tpu.vector_store %arg8[%c0_20, %c0_21, %c0_22], %20 {strides = array<i32>} : memref<2x8x128xf32, #tpu.memory_space<vmem>>, vector<2x8x128xf32>,
    } else {
    }
    %c0_i32_1 = arith.constant 0 : i32
    %c128_i32 = arith.constant 128 : i32
    %3 = arith.muli %c0_i32_1, %c128_i32 : i32
    %4 = tpu.assume_multiple %3, 128 : i32
    %c0 = arith.constant 0 : index
    %c0_2 = arith.constant 0 : index
    %5 = arith.index_cast %4 : i32 to index
    %6 = vector.load %arg2[%c0, %c0_2, %5] : memref<2x8x256xf32, #tpu.memory_space<vmem>>, vector<2x8x128xf32>
    %c0_3 = arith.constant 0 : index
    %c0_4 = arith.constant 0 : index
    %c0_5 = arith.constant 0 : index
    %7 = vector.load %arg8[%c0_3, %c0_4, %c0_5] : memref<2x8x128xf32, #tpu.memory_space<vmem>>, vector<2x8x128xf32>
    %8 = arith.addf %7, %6 : vector<2x8x128xf32>
    %c0_6 = arith.constant 0 : index
    %c0_7 = arith.constant 0 : index
    %c0_8 = arith.constant 0 : index
    %9 = vector.load %arg8[%c0_6, %c0_7, %c0_8] : memref<2x8x128xf32, #tpu.memory_space<vmem>>, vector<2x8x128xf32>
    tpu.vector_store %arg8[%c0_6, %c0_7, %c0_8], %8 {strides = array<i32>} : memref<2x8x128xf32, #tpu.memory_space<vmem>>, vector<2x8x128xf32>,
    %c1_i32 = arith.constant 1 : i32
    %c128_i32_9 = arith.constant 128 : i32
    %10 = arith.muli %c1_i32, %c128_i32_9 : i32
    %11 = tpu.assume_multiple %10, 128 : i32
    %c0_10 = arith.constant 0 : index
    %c0_11 = arith.constant 0 : index
    %12 = arith.index_cast %11 : i32 to index
    %13 = vector.load %arg2[%c0_10, %c0_11, %12] : memref<2x8x256xf32, #tpu.memory_space<vmem>>, vector<2x8x128xf32>
    %c0_12 = arith.constant 0 : index
    %c0_13 = arith.constant 0 : index
    %c0_14 = arith.constant 0 : index
    %14 = vector.load %arg8[%c0_12, %c0_13, %c0_14] : memref<2x8x128xf32, #tpu.memory_space<vmem>>, vector<2x8x128xf32>
    %15 = arith.addf %14, %13 : vector<2x8x128xf32>
    %c0_15 = arith.constant 0 : index
    %c0_16 = arith.constant 0 : index
    %c0_17 = arith.constant 0 : index
    %16 = vector.load %arg8[%c0_15, %c0_16, %c0_17] : memref<2x8x128xf32, #tpu.memory_space<vmem>>, vector<2x8x128xf32>
    tpu.vector_store %arg8[%c0_15, %c0_16, %c0_17], %15 {strides = array<i32>} : memref<2x8x128xf32, #tpu.memory_space<vmem>>, vector<2x8x128xf32>,
    %c2_i32 = arith.constant 2 : i32
    %c0_i32_18 = arith.constant 0 : i32
    %17 = arith.cmpi eq, %arg1, %c0_i32_18 : i32
    %18 = arith.extui %17 : i1 to i32
    %c0_i32_19 = arith.constant 0 : i32
    %19 = arith.cmpi ne, %18, %c0_i32_19 : i32
    scf.if %19 {
      %c0_20 = arith.constant 0 : index
      %c0_21 = arith.constant 0 : index
      %c0_22 = arith.constant 0 : index
      %20 = vector.load %arg8[%c0_20, %c0_21, %c0_22] : memref<2x8x128xf32, #tpu.memory_space<vmem>>, vector<2x8x128xf32>
      %cst = arith.constant dense<0.000000e+00> : vector<2x8xf32>
      %21 = vector.multi_reduction <add>, %20, %cst [2] : vector<2x8x128xf32> to vector<2x8xf32>
      %cst_23 = arith.constant 3.906250e-03 : f32
      %22 = vector.broadcast %cst_23 : f32 to vector<2x8xf32>
      %23 = arith.mulf %21, %22 : vector<2x8xf32>
      %c0_24 = arith.constant 0 : index
      %c0_25 = arith.constant 0 : index
      %24 = vector.load %arg3[%c0_24, %c0_25] : memref<8x2xf32, #tpu.memory_space<vmem>>, vector<8x2xf32>
      %cst_26 = arith.constant dense<0.000000e+00> : vector<2x2xf32>
      %25 = tpu.matmul %23, %24, %cst_26 {dimension_numbers = #tpu.dot_dimension_numbers<[1], [0], [0], [1], [0, 0, 1, 1], [], []>} : vector<2x8xf32>, vector<8x2xf32>, vector<2x2xf32> -> vector<2x2xf32>
      %c0_27 = arith.constant 0 : index
      %c0_28 = arith.constant 0 : index
      %26 = vector.load %arg4[%c0_27, %c0_28] : memref<1x2xf32, #tpu.memory_space<vmem>>, vector<1x2xf32>
      %27 = vector.broadcast %26 : vector<1x2xf32> to vector<2x2xf32>
      %28 = arith.addf %25, %27 : vector<2x2xf32>
      %cst_29 = arith.constant 0.000000e+00 : f32
      %29 = vector.broadcast %cst_29 : f32 to vector<2x2xf32>
      %30 = arith.maximumf %28, %29 : vector<2x2xf32>
      %c0_30 = arith.constant 0 : index
      %c0_31 = arith.constant 0 : index
      %31 = vector.load %arg5[%c0_30, %c0_31] : memref<2x4xf32, #tpu.memory_space<vmem>>, vector<2x4xf32>
      %cst_32 = arith.constant dense<0.000000e+00> : vector<2x4xf32>
      %32 = tpu.matmul %30, %31, %cst_32 {dimension_numbers = #tpu.dot_dimension_numbers<[1], [0], [0], [1], [0, 0, 1, 1], [], []>} : vector<2x2xf32>, vector<2x4xf32>, vector<2x4xf32> -> vector<2x4xf32>
      %c0_33 = arith.constant 0 : index
      %c0_34 = arith.constant 0 : index
      %33 = vector.load %arg6[%c0_33, %c0_34] : memref<1x4xf32, #tpu.memory_space<vmem>>, vector<1x4xf32>
      %34 = vector.broadcast %33 : vector<1x4xf32> to vector<2x4xf32>
      %35 = arith.addf %32, %34 : vector<2x4xf32>
      %36 = arith.negf %35 : vector<2x4xf32>
      %37 = math.exp %36 : vector<2x4xf32>
      %cst_35 = arith.constant 1.000000e+00 : f32
      %38 = vector.broadcast %cst_35 : f32 to vector<2x4xf32>
      %39 = arith.addf %38, %37 : vector<2x4xf32>
      %40 = arith.divf %38, %39 : vector<2x4xf32>
      %cst_36 = arith.constant 2.000000e+00 : f32
      %41 = vector.broadcast %cst_36 : f32 to vector<2x4xf32>
      %42 = arith.mulf %41, %40 : vector<2x4xf32>
      %cst_37 = arith.constant 1.000000e+00 : f32
      %43 = vector.broadcast %cst_37 : f32 to vector<2x4xf32>
      %44 = arith.subf %42, %43 : vector<2x4xf32>
      %c0_38 = arith.constant 0 : index
      %c0_39 = arith.constant 0 : index
      %c0_40 = arith.constant 0 : index
      %45 = vector.load %arg7[%c0_38, %c0_39, %c0_40] : memref<1x2x4xf32, #tpu.memory_space<vmem>>, vector<1x2x4xf32>
      %46 = vector.shape_cast %45 : vector<1x2x4xf32> to vector<2x4xf32>
      %47 = vector.shape_cast %44 : vector<2x4xf32> to vector<1x2x4xf32>
      tpu.vector_store %arg7[%c0_38, %c0_39, %c0_40], %47 {strides = array<i32>} : memref<1x2x4xf32, #tpu.memory_space<vmem>>, vector<1x2x4xf32>,
    } else {
    }
    return
  }
  func.func @transform_0(%arg0: i32, %arg1: i32) -> (i32, i32, i32) {
    %c0_i32 = arith.constant 0 : i32
    %c0_i32_0 = arith.constant 0 : i32
    return %arg0, %c0_i32, %arg1 : i32, i32, i32
  }
  func.func @transform_1(%arg0: i32, %arg1: i32) -> (i32, i32) {
    %c0_i32 = arith.constant 0 : i32
    %c0_i32_0 = arith.constant 0 : i32
    %c0_i32_1 = arith.constant 0 : i32
    return %c0_i32, %c0_i32_0 : i32, i32
  }
  func.func @transform_2(%arg0: i32, %arg1: i32) -> (i32, i32) {
    %c0_i32 = arith.constant 0 : i32
    %c0_i32_0 = arith.constant 0 : i32
    %c0_i32_1 = arith.constant 0 : i32
    return %c0_i32, %c0_i32_0 : i32, i32
  }
  func.func @transform_3(%arg0: i32, %arg1: i32) -> (i32, i32) {
    %c0_i32 = arith.constant 0 : i32
    %c0_i32_0 = arith.constant 0 : i32
    %c0_i32_1 = arith.constant 0 : i32
    return %c0_i32, %c0_i32_0 : i32, i32
  }
  func.func @transform_4(%arg0: i32, %arg1: i32) -> (i32, i32) {
    %c0_i32 = arith.constant 0 : i32
    %c0_i32_0 = arith.constant 0 : i32
    %c0_i32_1 = arith.constant 0 : i32
    return %c0_i32, %c0_i32_0 : i32, i32
  }
  func.func @transform_5(%arg0: i32, %arg1: i32) -> (i32, i32, i32) {
    %c0_i32 = arith.constant 0 : i32
    %c0_i32_0 = arith.constant 0 : i32
    %c0_i32_1 = arith.constant 0 : i32
    return %arg0, %c0_i32, %c0_i32_0 : i32, i32, i32
  }
}

</mosaic_0001>

<bundles_post_ra>
// kernel: tpu_custom_call.1
= control target key start
LH: loop header
LB: loop body
LE: loop exit
PB: predicated region body
PF: predicated region fallthrough
CT: control target
= control target key end

     0   :  { %10 = vsyncpa [#allocation4], 0  ;;  %s427_s0 = inlined_call_operand.hbm [shape: f32[2,8,256], index: 0, kind: input, shape index: {}]   ;;  %s428_s1 = inlined_call_operand.vmem [shape: f32[8,2], index: 1, kind: input, shape index: {}]   ;;  %s429_s2 = inlined_call_operand.vmem [shape: f32[1,2], index: 2, kind: input, shape index: {}]   ;;  %s430_s3 = inlined_call_operand.vmem [shape: f32[2,4], index: 3, kind: input, shape index: {}]   ;;  %s431_s4 = inlined_call_operand.vmem [shape: f32[1,4], index: 4, kind: input, shape index: {}]   ;;  %s432_s5 = inlined_call_operand.hbm [shape: f32[1,2,4], index: 5, kind: output, shape index: {}]  }
   0x1   :  { %11 = vsyncpa [#allocation5], 0  ;;  %s355_s18 = smov [#allocation3]   ;;  %s307_s22 = scalar_lea.hbm %s427_s0, 512 }
   0x2   :  { %s17_s19 = sshll.u32 %s355_s18, 4  ;;  %p308_p0 = scmp.ne.s32.totalorder %s427_s0, %s307_s22  ;;  %s18_s19 = int_to_ptr.vmem [resolvable:$true] %s17_s19 }
   0x3   :  { %p311_p1 = scmp.lt.u32.totalorder %s307_s22, %s427_s0 }
   0x5   :  { %p313_p2 = pnand %p311_p1, %p308_p0 }
   0x7   :  { %316 = shalt.err (!%p313_p2)
}
   0x8   :  { %s317_s27 = scalar_lea.vmem %s18_s19, 512  ;;  %p322_p4 = scmp.lt.s32.totalorder %s18_s19, %s18_s19 }
   0x9   :  { %p318_p3 = scmp.ne.s32.totalorder %s18_s19, %s317_s27  ;;  %p323_p5 = scmp.lt.s32.totalorder %s317_s27, %s317_s27 }
   0xb   :  { %p324_p6 = por %p323_p5, %p322_p4 }
   0xd   :  { %p325_p7 = pnand %p324_p6, %p318_p3 }
   0xf   :  { %328 = shalt.err (!%p325_p7)
}
  0x10   :  { %s356_s28 = smov 256   ;;  %s357_s29 = smov 16  }
  0x11   :  { %23 = dma.hbm_to_vmem [thread:$0]  %s427_s0, 512, %s18_s19, [#allocation4], %s356_s28, %s356_s28, %s357_s29  }
  0x12   :  { %351 = dma.done.wait [#allocation4], 512  }
  0x13   :  { %352 = vsyncadd [#allocation4], 4294966784  ;;  %v41_v0 = vld [vmem:[#allocation3] sm:$0xff]  ;;  %v50_v1 = vld [vmem:[#allocation3 + $0x8] sm:$0xff]  ;;  %v358_v7 = vmov 0.0   ;;  %vm359_vm0 = vmmov 0   ;;  %v79_v8 = vlaneseq }
  0x14   :  { %v42_v2 = vld [vmem:[#allocation3 + $0x10] sm:$0xff]  ;;  %v54_v3 = vadd.f32 %v50_v1, %v41_v0  ;;  %v51_v4 = vld [vmem:[#allocation3 + $0x18] sm:$0xff]  ;;  %v69_v6 = vld [vmem:[%s428_s1] sm:$0xff]  ;;  %287 = vmatprep.subr.mxu0 %v358_v7  ;;  %289 = vmatprep.mubr.msk.f32.mxu0 %vm359_vm0, %v358_v7  ;;  %vm89_vm1 = vcmask 1041409   ;;  %vm91_vm2 = vcmask 64512   ;;  %vm177_vm3 = vcmask 1041408  }
  0x15   :  { %v55_v5 = vadd.f32 %v51_v4, %v42_v2  ;;  %288 = vmatpush3.msra.mxu0 %v69_v6  ;;  %292 = vmatprep.subr.mxu1 %v358_v7  ;;  %v80_v9 = vand.u32 127, %v79_v8  ;;  %v82_v10 = vshrl.u32 %v79_v8, 7  ;;  %v165_v19 = vld [vmem:[%s430_s3] sm:$0x3]  ;;  %vm173_vm4 = vcmask 15360  }
  0x16   :  { %63 = vadd.xlane.f32.xlu0 %v54_v3  ;;  %294 = vmatprep.mubr.msk.f32.mxu1 %vm359_vm0, %v358_v7  ;;  %v276_v20 = vld [vmem:[%s429_s2] ss:$0 sm:$0xff]  ;;  %s360_s2 = smov [#allocation6]   ;;  %vm259_vm5 = vcmask 25600  }
  0x17   :  { %v83_v12 = vsub.s32 %v80_v9, %v82_v10  ;;  %293 = vmatpush3.msk.msra.mxu1 %vm177_vm3, %v165_v19  ;;  %v278_v25 = vld [vmem:[%s431_s4] ss:$0 sm:$0xff]  ;;  %s267_s3 = sshll.u32 %s360_s2, 4  ;;  %s268_s3 = int_to_ptr.vmem [resolvable:$true] %s267_s3 }
  0x18   :  { %s329_s13 = scalar_lea.vmem %s268_s3, 32  ;;  %p334_p9 = scmp.lt.s32.totalorder %s268_s3, %s268_s3 }
  0x19   :  { %p330_p8 = scmp.ne.s32.totalorder %s268_s3, %s329_s13  ;;  %p335_p10 = scmp.lt.s32.totalorder %s329_s13, %s329_s13 }
  0x1a   :  { %65 = vadd.xlane.f32.xlu0 %v55_v5 }
  0x1b   :  { %p336_p11 = por %p335_p10, %p334_p9 }
  0x1d   :  { %p337_p12 = pnand %p336_p11, %p330_p8 }
  0xa3   :  { %v64_v11 = vpop.xlane.xlu0 %63 }
  0xa4   :  { %v67_v13 = vmul.f32 0.00390625, %v64_v11 }
  0xa6   :  { %v84_v16 = vrot.slane %v67_v13, %v83_v12 }
  0xa7   :  { %v66_v14 = vpop.xlane.xlu0 %65 }
  0xa8   :  { %v68_v15 = vmul.f32 0.00390625, %v66_v14 }
  0xaa   :  { %v88_v17 = vrot.slane %v68_v15, %v83_v12 }
  0xac   :  { %v90_v18 = vsel %vm89_vm1, %v88_v17, %v84_v16 }
  0xad   :  { %290 = vmatmul.mubr.msk.f32.vlgmr.msra.gmra.mrb[0].mxu0 %vm91_vm2, %v90_v18 }
 0x180   :  { %v160_v21 = vpop.f32.mrb[0].mxu0 }
 0x181   :  { %v161_v22 = vadd.f32 %v276_v20, %v160_v21  ;;  %v291_v23 = vpop.f32.mrb[1].mxu0 }
 0x183   :  { %v164_v24 = vmax.f32 %v161_v22, 0.0 }
 0x185   :  { %295 = vmatmul.mubr.msk.f32.vlgmr.msra.gmra.mrb[0].mxu1 %vm173_vm4, %v164_v24 }
 0x258   :  { %v247_v26 = vpop.f32.mrb[0].mxu1 }
 0x259   :  { %v248_v27 = vadd.f32 %v278_v25, %v247_v26  ;;  %v296_v28 = vpop.f32.mrb[1].mxu1 }
 0x25b   :  { %v281_v29 = vmul.f32 -1.442695, %v248_v27 }
 0x25d   :  { %303 = vpow2.f32 %v281_v29 }
 0x267   :  { %v304_v30 = vpop.eup %303 }
 0x268   :  { %v254_v31 = vadd.f32 1.0, %v304_v30 }
 0x26a   :  { %305 = vrcp.f32 %v254_v31 }
 0x274   :  { %v306_v32 = vpop.eup %305 }
 0x275   :  { %v257_v33 = vmul.f32 2.0, %v306_v32 }
 0x277   :  { %v282_v34 = vadd.f32 -1.0, %v257_v33 }
 0x279   :  { %260 = vst.msk [vmem:[#allocation6] sm:$0x3] %vm259_vm5, %v282_v34 }
 0x27a   :  { %340 = shalt.err (!%p337_p12)
}
 0x27b   :  { %s341_s15 = scalar_lea.hbm %s432_s5, 32 }
 0x27c   :  { %p342_p13 = scmp.ne.s32.totalorder %s432_s5, %s341_s15  ;;  %p345_p0 = scmp.lt.u32.totalorder %s341_s15, %s432_s5 }
 0x27e   :  { %p347_p1 = pnand %p345_p0, %p342_p13 }
 0x280   :  { %350 = shalt.err (!%p347_p1)
}
 0x281   :  { %270 = dma.vmem_to_hbm [thread:$0]  %s268_s3, 32, %s432_s5, [#allocation5]  }
 0x282   :  { %353 = dma.done.wait [#allocation5], 32  }
 0x283   :  { %354 = vsyncadd [#allocation5], 4294967264 }
 0x284   :  { %274 = vsyncpa [#allocation4], 1 }
 0x285   :  { %275 = vsyncpa [#allocation5], 1 }

</bundles_post_ra>
